<compile_context>
chip_gen: v7x
topology: tpu7x:2x2x1
jax: 0.10.0
libtpu: 0.0.40
codegen_flags: <defaults>
</compile_context>

<pallas_src>
import math
from functools import partial

import jax
import jax.numpy as jnp
from jax import lax
from jax.experimental import pallas as pl
from jax.experimental.pallas import tpu as pltpu


# --------------------------------------------------------------------------- #
# Kernels
# --------------------------------------------------------------------------- #
def _attn_single_ktile_kernel(q_ref, k_ref, v_ref, o_ref, *, scale):
    """Attention over the FULL key length for one (head-group, q-tile).

    No cross-grid-step state -> no scratch, no pl.when phases.
    q_ref: (G, TQ, D)   k_ref / v_ref: (G, Sk, D)   o_ref: (G, TQ, D)
    """
    q = q_ref[...] * jnp.asarray(scale, q_ref.dtype)   # fold 1/sqrt(D) into Q
    k = k_ref[...]
    v = v_ref[...]

    # scores = Q @ K^T (contract D of both operands, batch over head-group).
    s = lax.dot_general(
        q, k,
        dimension_numbers=(((2,), (2,)), ((0,), (0,))),
        preferred_element_type=jnp.float32,
    )                                                   # (G, TQ, Sk) f32
    m = jnp.max(s, axis=-1, keepdims=True)
    p = jnp.exp(s - m)
    l = jnp.sum(p, axis=-1, keepdims=True)

    pv = lax.dot_general(
        p.astype(v.dtype), v,
        dimension_numbers=(((2,), (1,)), ((0,), (0,))),
        preferred_element_type=jnp.float32,
    )                                                   # (G, TQ, D) f32
    inv_l = pl.reciprocal(l, approx=True)               # EUP slot
    o_ref[...] = (pv * inv_l).astype(o_ref.dtype)


def _flash_attention_kernel(q_ref, k_ref, v_ref, o_ref, m_sc, l_sc, acc_sc, *, scale):
    """One (head-group, q-tile, k-tile) step of online-softmax attention.

    q_ref:  (G, TQ, D)      k_ref / v_ref: (G, TK, D)
    o_ref:  (G, TQ, D)      written only on the last k-tile
    m_sc:   (G, TQ, 1) f32  running row max
    l_sc:   (G, TQ, 1) f32  running denominator
    acc_sc: (G, TQ, D) f32  running numerator
    """
    ki = pl.program_id(2)

    @pl.when(ki == 0)
    def _init():
        m_sc[...] = jnp.full(m_sc.shape, -jnp.inf, jnp.float32)
        l_sc[...] = jnp.zeros(l_sc.shape, jnp.float32)
        acc_sc[...] = jnp.zeros(acc_sc.shape, jnp.float32)

    q = q_ref[...] * jnp.asarray(scale, q_ref.dtype)
    k = k_ref[...]
    v = v_ref[...]

    s = lax.dot_general(
        q, k,
        dimension_numbers=(((2,), (2,)), ((0,), (0,))),
        preferred_element_type=jnp.float32,
    )                                                   # (G, TQ, TK) f32

    m_prev = m_sc[...]
    m_new = jnp.maximum(m_prev, jnp.max(s, axis=-1, keepdims=True))
    alpha = jnp.exp(m_prev - m_new)                     # rescale of old stats
    p = jnp.exp(s - m_new)

    l_sc[...] = alpha * l_sc[...] + jnp.sum(p, axis=-1, keepdims=True)

    pv = lax.dot_general(
        p.astype(v.dtype), v,
        dimension_numbers=(((2,), (1,)), ((0,), (0,))),
        preferred_element_type=jnp.float32,
    )                                                   # (G, TQ, D) f32
    acc_sc[...] = alpha * acc_sc[...] + pv
    m_sc[...] = m_new

    @pl.when(ki == pl.num_programs(2) - 1)
    def _finalize():
        inv_l = pl.reciprocal(l_sc[...], approx=True)
        o_ref[...] = (acc_sc[...] * inv_l).astype(o_ref.dtype)


# --------------------------------------------------------------------------- #
# Tiling heuristics
# --------------------------------------------------------------------------- #
def _largest_divisor_leq(n, cap):
    cap = max(1, min(n, cap))
    for d in range(cap, 0, -1):
        if n % d == 0:
            return d
    return 1


def _pick_seq_tile(dim, cap, align=8):
    """Largest tile <= cap that divides dim and is sublane-aligned (or full dim)."""
    if dim <= cap:
        return dim                       # full extent is always a legal block dim
    for d in range(cap, 0, -1):
        if dim % d == 0 and d % align == 0:
            return d
    return dim                           # no legal divisor -> fall back to full


def _estimate_vmem_bytes(g, tq, tk, D, itemsize, flash):
    # Double-buffered Q/K/V input blocks + double-buffered output block.
    io = 2 * itemsize * g * (tq * D + 2 * tk * D) + 2 * itemsize * g * tq * D
    # f32 scratch (m, l, acc) only on the flash path.
    scratch = (4 * g * tq * (D + 2)) if flash else 0
    return io + scratch


def _choose_tiles(BH, Sq, Sk, D, itemsize, q_tile_cap, k_tile_cap, budget):
    tq = _pick_seq_tile(Sq, q_tile_cap)
    tk = _pick_seq_tile(Sk, k_tile_cap)
    # Batch heads per grid step so each step feeds >= ~256 rows to the MXU.
    g = _largest_divisor_leq(BH, max(1, 256 // tq))

    for _ in range(16):
        flash = tk < Sk
        if _estimate_vmem_bytes(g, tq, tk, D, itemsize, flash) <= budget:
            break
        new_tk = _pick_seq_tile(Sk, max(8, tk // 2)) if tk > 8 else tk
        if new_tk < tk:
            tk = new_tk
            continue
        if g > 1:
            g = _largest_divisor_leq(BH, max(1, g // 2))
            continue
        new_tq = _pick_seq_tile(Sq, max(8, tq // 2)) if tq > 8 else tq
        if new_tq < tq:
            tq = new_tq
            continue
        break                             # cannot shrink further; let VMEM limit decide
    return g, tq, tk


# --------------------------------------------------------------------------- #
# Wrapper
# --------------------------------------------------------------------------- #
def calculate_attention(Q, K, V, *, q_tile_cap=256, k_tile_cap=512):
    """Pallas equivalent of CalculateAttention.forward.

    Q: (*batch, Sq, D), K/V: (*batch, Sk, D)  ->  (*batch, Sq, D)
    """
    *batch, Sq, D = Q.shape
    Sk = K.shape[-2]
    assert K.shape == (*batch, Sk, D) and V.shape == (*batch, Sk, D)

    BH = 1
    for b in batch:
        BH *= b
    scale = 1.0 / math.sqrt(D)
    itemsize = jnp.dtype(Q.dtype).itemsize

    g, tq, tk = _choose_tiles(BH, Sq, Sk, D, itemsize, q_tile_cap, k_tile_cap,
                              budget=40 * 1024 * 1024)

    q3 = Q.reshape(BH, Sq, D)
    k3 = K.reshape(BH, Sk, D)
    v3 = V.reshape(BH, Sk, D)

    common_cp = dict(vmem_limit_bytes=48 * 1024 * 1024)  # safe on v7x (64 MiB VMEM)

    if tk == Sk:
        # ---- Fast path: whole Sk in one tile; no scratch, no reduction axis ---- #
        grid = (BH // g, Sq // tq)
        out3 = pl.pallas_call(
            partial(_attn_single_ktile_kernel, scale=scale),
            out_shape=jax.ShapeDtypeStruct((BH, Sq, D), Q.dtype),
            grid_spec=pltpu.PrefetchScalarGridSpec(
                num_scalar_prefetch=0,
                grid=grid,
                in_specs=[
                    pl.BlockSpec((g, tq, D), lambda gi, qi: (gi, qi, 0)),
                    pl.BlockSpec((g, Sk, D), lambda gi, qi: (gi, 0, 0)),
                    pl.BlockSpec((g, Sk, D), lambda gi, qi: (gi, 0, 0)),
                ],
                out_specs=pl.BlockSpec((g, tq, D), lambda gi, qi: (gi, qi, 0)),
            ),
            compiler_params=pltpu.CompilerParams(
                dimension_semantics=("parallel", "parallel"),
                **common_cp,
            ),
        )(q3, k3, v3)
    else:
        # ---- Flash path: online softmax over Sk tiles ---- #
        grid = (BH // g, Sq // tq, Sk // tk)
        out3 = pl.pallas_call(
            partial(_flash_attention_kernel, scale=scale),
            out_shape=jax.ShapeDtypeStruct((BH, Sq, D), Q.dtype),
            grid_spec=pltpu.PrefetchScalarGridSpec(
                num_scalar_prefetch=0,
                grid=grid,
                in_specs=[
                    pl.BlockSpec((g, tq, D), lambda gi, qi, ki: (gi, qi, 0)),
                    pl.BlockSpec((g, tk, D), lambda gi, qi, ki: (gi, ki, 0)),
                    pl.BlockSpec((g, tk, D), lambda gi, qi, ki: (gi, ki, 0)),
                ],
                out_specs=pl.BlockSpec((g, tq, D), lambda gi, qi, ki: (gi, qi, 0)),
                scratch_shapes=[
                    pltpu.VMEM((g, tq, 1), jnp.float32),   # running row max
                    pltpu.VMEM((g, tq, 1), jnp.float32),   # running denominator
                    pltpu.VMEM((g, tq, D), jnp.float32),   # running numerator
                ],
            ),
            compiler_params=pltpu.CompilerParams(
                dimension_semantics=("parallel", "parallel", "arbitrary"),
                **common_cp,
            ),
        )(q3, k3, v3)

    return out3.reshape(*batch, Sq, D)


# --------------------------------------------------------------------------- #
# Reference + test
# --------------------------------------------------------------------------- #
def _reference(Q, K, V):
    D = Q.shape[-1]
    s = jnp.einsum("...qd,...kd->...qk", Q, K) / math.sqrt(D)
    p = jax.nn.softmax(s, axis=-1)
    return jnp.einsum("...qk,...kd->...qd", p, V)


if __name__ == "__main__":
    key = jax.random.PRNGKey(0)

    # Case 1: small shapes (matches the module's typical small forward) -> fast path.
    B, H, Sq, Sk, D = 2, 4, 8, 8, 32
    kq, kk, kv, key = jax.random.split(key, 4)
    Q = jax.random.normal(kq, (B, H, Sq, D), dtype=jnp.float32)
    K = jax.random.normal(kk, (B, H, Sk, D), dtype=jnp.float32)
    V = jax.random.normal(kv, (B, H, Sk, D), dtype=jnp.float32)
    out = jax.block_until_ready(calculate_attention(Q, K, V))
    ref = _reference(Q, K, V)
    assert out.shape == (B, H, Sq, D)
    # Loose-ish tolerance: approx (EUP) reciprocal ~2^-12 relative error.
    assert jnp.allclose(out, ref, atol=2e-3, rtol=2e-3), "mismatch vs reference (small)"

    # Case 2: long keys -> exercises the flash (multi k-tile) path.
    B2, H2, Sq2, Sk2, D2 = 1, 2, 128, 1024, 64
    kq, kk, kv, key = jax.random.split(key, 4)
    Q2 = jax.random.normal(kq, (B2, H2, Sq2, D2), dtype=jnp.float32)
    K2 = jax.random.normal(kk, (B2, H2, Sk2, D2), dtype=jnp.float32)
    V2 = jax.random.normal(kv, (B2, H2, Sk2, D2), dtype=jnp.float32)
    out2 = jax.block_until_ready(calculate_attention(Q2, K2, V2))
    ref2 = _reference(Q2, K2, V2)
    assert out2.shape == (B2, H2, Sq2, D2)
    assert jnp.allclose(out2, ref2, atol=2e-3, rtol=2e-3), "mismatch vs reference (flash)"

    print("KERNEL_OK")
</pallas_src>

<mosaic_0001>
module attributes {stable_mosaic.version = 11 : i64} {
  func.func @_attn_single_ktile_kernel(%arg0: i32, %arg1: i32, %arg2: memref<8x8x32xf32, #tpu.memory_space<vmem>>, %arg3: memref<8x8x32xf32, #tpu.memory_space<vmem>>, %arg4: memref<8x8x32xf32, #tpu.memory_space<vmem>>, %arg5: memref<8x8x32xf32, #tpu.memory_space<vmem>>) attributes {dimension_semantics = [#tpu.dimension_semantics<parallel>, #tpu.dimension_semantics<parallel>], iteration_bounds = array<i64: 1, 1>, scalar_prefetch = 0 : i64, scratch_operands = 0 : i64, tpu.core_type = #tpu.core_type<tc>, window_params = [{transform_indices = @transform_0, window_bounds = array<i64: 8, 8, 32>}, {transform_indices = @transform_1, window_bounds = array<i64: 8, 8, 32>}, {transform_indices = @transform_2, window_bounds = array<i64: 8, 8, 32>}, {transform_indices = @transform_3, window_bounds = array<i64: 8, 8, 32>}]} {
    %c0 = arith.constant 0 : index
    %c0_0 = arith.constant 0 : index
    %c0_1 = arith.constant 0 : index
    %0 = vector.load %arg2[%c0, %c0_0, %c0_1] : memref<8x8x32xf32, #tpu.memory_space<vmem>>, vector<8x8x32xf32>
    %cst = arith.constant 0.176776692 : f32
    %1 = vector.broadcast %cst : f32 to vector<8x8x32xf32>
    %2 = arith.mulf %0, %1 : vector<8x8x32xf32>
    %c0_2 = arith.constant 0 : index
    %c0_3 = arith.constant 0 : index
    %c0_4 = arith.constant 0 : index
    %3 = vector.load %arg3[%c0_2, %c0_3, %c0_4] : memref<8x8x32xf32, #tpu.memory_space<vmem>>, vector<8x8x32xf32>
    %c0_5 = arith.constant 0 : index
    %c0_6 = arith.constant 0 : index
    %c0_7 = arith.constant 0 : index
    %4 = vector.load %arg4[%c0_5, %c0_6, %c0_7] : memref<8x8x32xf32, #tpu.memory_space<vmem>>, vector<8x8x32xf32>
    %cst_8 = arith.constant dense<0.000000e+00> : vector<8x8x8xf32>
    %5 = tpu.matmul %2, %3, %cst_8 {dimension_numbers = #tpu.dot_dimension_numbers<[2], [2], [1], [1], [0, 0, 0, 1, 1, 1], [0], [0]>} : vector<8x8x32xf32>, vector<8x8x32xf32>, vector<8x8x8xf32> -> vector<8x8x8xf32>
    %cst_9 = arith.constant dense<0xFF800000> : vector<8x8xf32>
    %6 = vector.multi_reduction <maximumf>, %5, %cst_9 [2] : vector<8x8x8xf32> to vector<8x8xf32>
    %7 = vector.shape_cast %6 : vector<8x8xf32> to vector<8x8x1xf32>
    %8 = vector.broadcast %7 : vector<8x8x1xf32> to vector<8x8x8xf32>
    %9 = arith.subf %5, %8 : vector<8x8x8xf32>
    %10 = math.exp %9 : vector<8x8x8xf32>
    %cst_10 = arith.constant dense<0.000000e+00> : vector<8x8xf32>
    %11 = vector.multi_reduction <add>, %10, %cst_10 [2] : vector<8x8x8xf32> to vector<8x8xf32>
    %12 = vector.shape_cast %11 : vector<8x8xf32> to vector<8x8x1xf32>
    %cst_11 = arith.constant dense<0.000000e+00> : vector<8x8x32xf32>
    %13 = tpu.matmul %10, %4, %cst_11 {dimension_numbers = #tpu.dot_dimension_numbers<[2], [1], [1], [2], [0, 0, 0, 1, 1, 2], [0], [0]>} : vector<8x8x8xf32>, vector<8x8x32xf32>, vector<8x8x32xf32> -> vector<8x8x32xf32>
    %14 = tpu.reciprocal %12 {approx = true} : vector<8x8x1xf32> -> vector<8x8x1xf32>
    %15 = vector.broadcast %14 : vector<8x8x1xf32> to vector<8x8x32xf32>
    %16 = arith.mulf %13, %15 : vector<8x8x32xf32>
    %c0_12 = arith.constant 0 : index
    %c0_13 = arith.constant 0 : index
    %c0_14 = arith.constant 0 : index
    %17 = vector.load %arg5[%c0_12, %c0_13, %c0_14] : memref<8x8x32xf32, #tpu.memory_space<vmem>>, vector<8x8x32xf32>
    tpu.vector_store %arg5[%c0_12, %c0_13, %c0_14], %16 {strides = array<i32>} : memref<8x8x32xf32, #tpu.memory_space<vmem>>, vector<8x8x32xf32>,
    return
  }
  func.func @transform_0(%arg0: i32, %arg1: i32) -> (i32, i32, i32) {
    %c0_i32 = arith.constant 0 : i32
    %c0_i32_0 = arith.constant 0 : i32
    return %arg0, %arg1, %c0_i32 : i32, i32, i32
  }
  func.func @transform_1(%arg0: i32, %arg1: i32) -> (i32, i32, i32) {
    %c0_i32 = arith.constant 0 : i32
    %c0_i32_0 = arith.constant 0 : i32
    %c0_i32_1 = arith.constant 0 : i32
    return %arg0, %c0_i32, %c0_i32_0 : i32, i32, i32
  }
  func.func @transform_2(%arg0: i32, %arg1: i32) -> (i32, i32, i32) {
    %c0_i32 = arith.constant 0 : i32
    %c0_i32_0 = arith.constant 0 : i32
    %c0_i32_1 = arith.constant 0 : i32
    return %arg0, %c0_i32, %c0_i32_0 : i32, i32, i32
  }
  func.func @transform_3(%arg0: i32, %arg1: i32) -> (i32, i32, i32) {
    %c0_i32 = arith.constant 0 : i32
    %c0_i32_0 = arith.constant 0 : i32
    return %arg0, %arg1, %c0_i32 : i32, i32, i32
  }
}

</mosaic_0001>

<bundles_post_ra>
// kernel: tpu_custom_call.1
= control target key start
LH: loop header
LB: loop body
LE: loop exit
PB: predicated region body
PF: predicated region fallthrough
CT: control target
= control target key end

     0   :  { %8 = vsyncpa [#allocation3], 0  ;;  %s1857_s0 = inlined_call_operand.hbm [shape: f32[8,8,32], index: 0, kind: input, shape index: {}]   ;;  %s1858_s1 = inlined_call_operand.hbm [shape: f32[8,8,32], index: 1, kind: input, shape index: {}]   ;;  %s1859_s2 = inlined_call_operand.hbm [shape: f32[8,8,32], index: 2, kind: input, shape index: {}]   ;;  %s1860_s3 = inlined_call_operand.hbm [shape: f32[8,8,32], index: 3, kind: output, shape index: {}]  }
   0x1   :  { %9 = vsyncpa [#allocation6], 0 }
   0x2   :  { %10 = vsyncpa [#allocation4], 0  ;;  %s1666_s12 = smov [#allocation5]   ;;  %s1667_s14 = smov [#allocation2]  }
   0x3   :  { %s28_s13 = sshll.u32 %s1666_s12, 4  ;;  %s16_s15 = sshll.u32 %s1667_s14, 4  ;;  %s29_s13 = int_to_ptr.vmem [resolvable:$true] %s28_s13  ;;  %s1694_s15 = int_to_ptr.vmem [resolvable:$true] %s16_s15 }
   0x4   :  { %s1572_s18 = scalar_lea.hbm %s1858_s1, 1024 }
   0x5   :  { %p1573_p0 = scmp.ne.s32.totalorder %s1858_s1, %s1572_s18  ;;  %p1576_p1 = scmp.lt.u32.totalorder %s1572_s18, %s1858_s1 }
   0x7   :  { %p1578_p2 = pnand %p1576_p1, %p1573_p0 }
   0x9   :  { %1581 = shalt.err (!%p1578_p2)
}
   0xa   :  { %s1582_s23 = scalar_lea.vmem %s29_s13, 1024  ;;  %p1587_p4 = scmp.lt.s32.totalorder %s29_s13, %s29_s13 }
   0xb   :  { %p1583_p3 = scmp.ne.s32.totalorder %s29_s13, %s1582_s23  ;;  %p1588_p5 = scmp.lt.s32.totalorder %s1582_s23, %s1582_s23 }
   0xd   :  { %p1589_p6 = por %p1588_p5, %p1587_p4 }
   0xf   :  { %p1590_p7 = pnand %p1589_p6, %p1583_p3 }
  0x11   :  { %1593 = shalt.err (!%p1590_p7)
}
  0x12   :  { %s1668_s24 = smov 128   ;;  %s1669_s25 = smov 8  }
  0x13   :  { %34 = dma.hbm_to_vmem [thread:$0]  %s1858_s1, 1024, %s29_s13, [#allocation6], %s1668_s24, %s1668_s24, %s1669_s25  }
  0x14   :  { %s1594_s30 = scalar_lea.hbm %s1857_s0, 1024 }
  0x15   :  { %p1595_p8 = scmp.ne.s32.totalorder %s1857_s0, %s1594_s30  ;;  %p1598_p9 = scmp.lt.u32.totalorder %s1594_s30, %s1857_s0 }
  0x17   :  { %p1600_p10 = pnand %p1598_p9, %p1595_p8 }
  0x19   :  { %1603 = shalt.err (!%p1600_p10)
}
  0x1a   :  { %s1604_s8 = scalar_lea.vmem %s1694_s15, 1024  ;;  %p1609_p12 = scmp.lt.s32.totalorder %s1694_s15, %s1694_s15 }
  0x1b   :  { %p1605_p11 = scmp.ne.s32.totalorder %s1694_s15, %s1604_s8  ;;  %p1610_p13 = scmp.lt.s32.totalorder %s1604_s8, %s1604_s8 }
  0x1d   :  { %p1611_p0 = por %p1610_p13, %p1609_p12 }
  0x1f   :  { %p1612_p1 = pnand %p1611_p0, %p1605_p11 }
  0x21   :  { %1615 = shalt.err (!%p1612_p1)
}
  0x22   :  { %22 = dma.hbm_to_vmem [thread:$0]  %s1857_s0, 1024, %s1694_s15, [#allocation3], %s1668_s24, %s1668_s24, %s1669_s25  }
  0x23   :  { %s1670_s10 = smov [#allocation7]   ;;  %s1616_s14 = scalar_lea.hbm %s1859_s2, 1024 }
  0x24   :  { %s40_s11 = sshll.u32 %s1670_s10, 4  ;;  %p1617_p2 = scmp.ne.s32.totalorder %s1859_s2, %s1616_s14  ;;  %s41_s11 = int_to_ptr.vmem [resolvable:$true] %s40_s11 }
  0x25   :  { %p1620_p3 = scmp.lt.u32.totalorder %s1616_s14, %s1859_s2 }
  0x27   :  { %p1622_p4 = pnand %p1620_p3, %p1617_p2 }
  0x29   :  { %1625 = shalt.err (!%p1622_p4)
}
  0x2a   :  { %s1626_s20 = scalar_lea.vmem %s41_s11, 1024  ;;  %p1631_p6 = scmp.lt.s32.totalorder %s41_s11, %s41_s11 }
  0x2b   :  { %p1627_p5 = scmp.ne.s32.totalorder %s41_s11, %s1626_s20  ;;  %p1632_p7 = scmp.lt.s32.totalorder %s1626_s20, %s1626_s20 }
  0x2d   :  { %p1633_p8 = por %p1632_p7, %p1631_p6 }
  0x2f   :  { %p1634_p9 = pnand %p1633_p8, %p1627_p5 }
  0x31   :  { %1637 = shalt.err (!%p1634_p9)
}
  0x32   :  { %46 = dma.hbm_to_vmem [thread:$0]  %s1859_s2, 1024, %s41_s11, [#allocation6], %s1668_s24, %s1668_s24, %s1669_s25  }
  0x33   :  { %1660 = dma.done.wait [#allocation3], 1024  }
  0x34   :  { %1661 = vsyncadd [#allocation3], 4294966272 }
  0x35   :  { %1662 = dma.done.wait [#allocation6], 2048  }
  0x36   :  { %1663 = vsyncadd [#allocation6], 4294965248  ;;  %v1671_v0 = vmov 0.0   ;;  %vm1672_vm0 = vmmov 0   ;;  %vm88_vm1 = vcmask 261120   ;;  %v72_v1 = vld [vmem:[#allocation5] sm:$0xff] }
  0x37   :  { %1452 = vmatprep.subr.mxu0 %v1671_v0  ;;  %1454 = vmatprep.mubr.msk.f32.mxu0 %vm1672_vm0, %v1671_v0  ;;  %v56_v2 = vld [vmem:[#allocation2] sm:$0xff]  ;;  %v73_v3 = vld [vmem:[#allocation5 + $0x8] sm:$0xff]  ;;  %v58_v6 = vld [vmem:[#allocation2 + $0x10] sm:$0xff]  ;;  %vm697_vm2 = vcmask 64512   ;;  %s1673_s2 = smov [#allocation8]  }
  0x38   :  { %1457 = vmatprep.subr.mxu1 %v1671_v0  ;;  %1459 = vmatprep.mubr.msk.f32.mxu1 %vm1672_vm0, %v1671_v0  ;;  %v64_v4 = vmul.f32 0.17677669, %v56_v2  ;;  %v57_v5 = vld [vmem:[#allocation2 + $0x8] sm:$0xff]  ;;  %v74_v7 = vld [vmem:[#allocation5 + $0x10] sm:$0xff]  ;;  %v75_v9 = vld [vmem:[#allocation5 + $0x18] sm:$0xff]  ;;  %s1383_s21 = sshll.u32 %s1673_s2, 4  ;;  %s1384_s21 = int_to_ptr.vmem [resolvable:$true] %s1383_s21 }
  0x39   :  { %1453 = vmatpush3.xpose.msk.msra.mxu0 %vm88_vm1, %v72_v1  ;;  %1458 = vmatpush3.xpose.msk.msra.mxu1 %vm88_vm1, %v73_v3  ;;  %v65_v8 = vmul.f32 0.17677669, %v57_v5  ;;  %v59_v10 = vld [vmem:[#allocation2 + $0x18] sm:$0xff]  ;;  %v66_v11 = vmul.f32 0.17677669, %v58_v6  ;;  %v60_v12 = vld [vmem:[#allocation2 + $0x20] sm:$0xff]  ;;  %p1643_p11 = scmp.lt.s32.totalorder %s1384_s21, %s1384_s21 }
  0x3a   :  { %1462 = vmatprep.subr.mxu0 %v1671_v0  ;;  %1467 = vmatprep.subr.mxu1 %v1671_v0  ;;  %v76_v13 = vld [vmem:[#allocation5 + $0x20] sm:$0xff]  ;;  %v67_v14 = vmul.f32 0.17677669, %v59_v10  ;;  %v61_v15 = vld [vmem:[#allocation2 + $0x28] sm:$0xff]  ;;  %v68_v16 = vmul.f32 0.17677669, %v60_v12 }
  0x3b   :  { %v77_v17 = vld [vmem:[#allocation5 + $0x28] sm:$0xff]  ;;  %v62_v18 = vld [vmem:[#allocation2 + $0x30] sm:$0xff]  ;;  %v69_v20 = vmul.f32 0.17677669, %v61_v15  ;;  %v63_v21 = vld [vmem:[#allocation2 + $0x38] sm:$0xff]  ;;  %s1638_s22 = scalar_lea.vmem %s1384_s21, 1024 }
  0x3c   :  { %1455 = vmatmul.mubr.msk.f32.vlgmr.msra.gmra.mrb[0].mxu0 %vm88_vm1, %v64_v4  ;;  %1460 = vmatmul.mubr.msk.f32.vlgmr.msra.gmra.mrb[0].mxu1 %vm88_vm1, %v65_v8  ;;  %v78_v19 = vld [vmem:[#allocation5 + $0x30] sm:$0xff]  ;;  %v70_v22 = vmul.f32 0.17677669, %v62_v18  ;;  %v79_v23 = vld [vmem:[#allocation5 + $0x38] sm:$0xff]  ;;  %v71_v24 = vmul.f32 0.17677669, %v63_v21  ;;  %p1639_p10 = scmp.ne.s32.totalorder %s1384_s21, %s1638_s22  ;;  %p1644_p12 = scmp.lt.s32.totalorder %s1638_s22, %s1638_s22 }
  0x3d   :  { %1463 = vmatpush3.xpose.msk.msra.mxu0 %vm88_vm1, %v74_v7  ;;  %1464 = vmatprep.mubr.msk.f32.mxu0 %vm1672_vm0, %v1671_v0  ;;  %v80_v49 = vld [vmem:[#allocation7] sm:$0xff]  ;;  %v81_v50 = vld [vmem:[#allocation7 + $0x8] sm:$0xff]  ;;  %v82_v7 = vld [vmem:[#allocation7 + $0x10] sm:$0xff] }
  0x3e   :  { %1472 = vmatprep.subr.mxu0 %v1671_v0  ;;  %1468 = vmatpush3.xpose.msk.msra.mxu1 %vm88_vm1, %v75_v9  ;;  %p1645_p13 = por %p1644_p12, %p1643_p11 }
  0x3f   :  { %1469 = vmatprep.mubr.msk.f32.mxu1 %vm1672_vm0, %v1671_v0  ;;  %1477 = vmatprep.subr.mxu1 %v1671_v0 }
  0x40   :  { %1465 = vmatmul.mubr.msk.f32.vlgmr.msra.gmra.mrb[2].mxu0 %vm88_vm1, %v66_v11  ;;  %p1646_p0 = pnand %p1645_p13, %p1639_p10 }
  0x41   :  { %1473 = vmatpush3.xpose.msk.msra.mxu0 %vm88_vm1, %v76_v13  ;;  %1474 = vmatprep.mubr.msk.f32.mxu0 %vm1672_vm0, %v1671_v0 }
  0x42   :  { %1470 = vmatmul.mubr.msk.f32.vlgmr.msra.gmra.mrb[2].mxu1 %vm88_vm1, %v67_v14  ;;  %1482 = vmatprep.subr.mxu0 %v1671_v0  ;;  %v83_v14 = vld [vmem:[#allocation7 + $0x18] sm:$0xff] }
  0x43   :  { %1478 = vmatpush3.xpose.msk.msra.mxu1 %vm88_vm1, %v77_v17  ;;  %1479 = vmatprep.mubr.msk.f32.mxu1 %vm1672_vm0, %v1671_v0 }
  0x44   :  { %1475 = vmatmul.mubr.msk.f32.vlgmr.msra.gmra.mrb[4].mxu0 %vm88_vm1, %v68_v16  ;;  %1487 = vmatprep.subr.mxu1 %v1671_v0 }
  0x45   :  { %1483 = vmatpush3.xpose.msk.msra.mxu0 %vm88_vm1, %v78_v19  ;;  %1484 = vmatprep.mubr.msk.f32.mxu0 %vm1672_vm0, %v1671_v0  ;;  %v84_v19 = vld [vmem:[#allocation7 + $0x20] sm:$0xff] }
  0x46   :  { %1480 = vmatmul.mubr.msk.f32.vlgmr.msra.gmra.mrb[4].mxu1 %vm88_vm1, %v69_v20  ;;  %1492 = vmatprep.subr.mxu0 %v1671_v0 }
  0x47   :  { %1488 = vmatpush3.xpose.msk.msra.mxu1 %vm88_vm1, %v79_v23  ;;  %1489 = vmatprep.mubr.msk.f32.mxu1 %vm1672_vm0, %v1671_v0 }
  0x48   :  { %1485 = vmatmul.mubr.msk.f32.vlgmr.msra.gmra.mrb[6].mxu0 %vm88_vm1, %v70_v22  ;;  %1497 = vmatprep.subr.mxu1 %v1671_v0  ;;  %v85_v22 = vld [vmem:[#allocation7 + $0x28] sm:$0xff] }
  0x49   :  { %1494 = vmatprep.mubr.msk.f32.mxu0 %vm1672_vm0, %v1671_v0  ;;  %1493 = vmatpush3.msra.mxu0 %v80_v49 }
  0x4a   :  { %1490 = vmatmul.mubr.msk.f32.vlgmr.msra.gmra.mrb[6].mxu1 %vm88_vm1, %v71_v24  ;;  %1502 = vmatprep.subr.mxu0 %v1671_v0 }
  0x4b   :  { %1499 = vmatprep.mubr.msk.f32.mxu1 %vm1672_vm0, %v1671_v0  ;;  %1498 = vmatpush3.msra.mxu1 %v81_v50 }
  0x4c   :  { %1507 = vmatprep.subr.mxu1 %v1671_v0 }
 0x10f   :  { %v161_v25 = vpop.f32.mrb[0].mxu0  ;;  %v237_v26 = vpop.f32.mrb[0].mxu1 }
 0x110   :  { %v1456_v27 = vpop.f32.mrb[1].mxu0  ;;  %v698_v28 = vsel %vm697_vm2, %v161_v25, -inf  ;;  %v1461_v29 = vpop.f32.mrb[1].mxu1  ;;  %v701_v30 = vsel %vm697_vm2, %v237_v26, -inf }
 0x111   :  { %699 = vmax.xlane.f32.xlu0 %v698_v28  ;;  %v87_v29 = vld [vmem:[#allocation7 + $0x38] sm:$0xff] }
 0x113   :  { %v313_v31 = vpop.f32.mrb[2].mxu0 }
 0x114   :  { %v1466_v32 = vpop.f32.mrb[3].mxu0  ;;  %v704_v33 = vsel %vm697_vm2, %v313_v31, -inf }
 0x115   :  { %702 = vmax.xlane.f32.xlu0 %v701_v30  ;;  %705 = vmax.xlane.f32.xlu1 %v704_v33  ;;  %v389_v34 = vpop.f32.mrb[2].mxu1 }
 0x116   :  { %v1471_v35 = vpop.f32.mrb[3].mxu1  ;;  %v707_v36 = vsel %vm697_vm2, %v389_v34, -inf }
 0x117   :  { %v465_v37 = vpop.f32.mrb[4].mxu0 }
 0x118   :  { %v710_v38 = vsel %vm697_vm2, %v465_v37, -inf  ;;  %v1476_v39 = vpop.f32.mrb[5].mxu0 }
 0x119   :  { %708 = vmax.xlane.f32.xlu1 %v707_v36  ;;  %711 = vmax.xlane.f32.xlu0 %v710_v38  ;;  %v541_v40 = vpop.f32.mrb[4].mxu1 }
 0x11a   :  { %v1481_v41 = vpop.f32.mrb[5].mxu1  ;;  %v713_v42 = vsel %vm697_vm2, %v541_v40, -inf }
 0x11b   :  { %v617_v43 = vpop.f32.mrb[6].mxu0 }
 0x11c   :  { %v716_v44 = vsel %vm697_vm2, %v617_v43, -inf  ;;  %v1486_v45 = vpop.f32.mrb[7].mxu0 }
 0x11d   :  { %714 = vmax.xlane.f32.xlu1 %v713_v42  ;;  %717 = vmax.xlane.f32.xlu0 %v716_v44  ;;  %v693_v46 = vpop.f32.mrb[6].mxu1 }
 0x11e   :  { %v1491_v47 = vpop.f32.mrb[7].mxu1  ;;  %v719_v48 = vsel %vm697_vm2, %v693_v46, -inf }
 0x121   :  { %720 = vmax.xlane.f32.xlu1 %v719_v48 }
 0x19e   :  { %v700_v51 = vpop.xlane.xlu0 %699 }
 0x19f   :  { %v722_v52 = vsub.f32 %v161_v25, %v700_v51 }
 0x1a1   :  { %v730_v53 = vmul.f32 1.442695, %v722_v52 }
 0x1a2   :  { %v703_v54 = vpop.xlane.xlu0 %702  ;;  %v706_v55 = vpop.xlane.xlu1 %705 }
 0x1a3   :  { %1540 = vpow2.f32 %v730_v53  ;;  %v723_v56 = vsub.f32 %v237_v26, %v703_v54  ;;  %v724_v57 = vsub.f32 %v313_v31, %v706_v55  ;;  %v86_v26 = vld [vmem:[#allocation7 + $0x30] sm:$0xff] }
 0x1a5   :  { %v732_v58 = vmul.f32 1.442695, %v723_v56  ;;  %v734_v59 = vmul.f32 1.442695, %v724_v57 }
 0x1a6   :  { %v709_v60 = vpop.xlane.xlu1 %708  ;;  %v712_v61 = vpop.xlane.xlu0 %711 }
 0x1a7   :  { %1542 = vpow2.f32 %v732_v58  ;;  %v725_v62 = vsub.f32 %v389_v34, %v709_v60  ;;  %v726_v63 = vsub.f32 %v465_v37, %v712_v61 }
 0x1a8   :  { %1544 = vpow2.f32 %v734_v59 }
 0x1a9   :  { %v736_v1 = vmul.f32 1.442695, %v725_v62  ;;  %v738_v2 = vmul.f32 1.442695, %v726_v63 }
 0x1aa   :  { %v715_v3 = vpop.xlane.xlu1 %714  ;;  %v718_v4 = vpop.xlane.xlu0 %717 }
 0x1ab   :  { %1546 = vpow2.f32 %v736_v1  ;;  %v727_v5 = vsub.f32 %v541_v40, %v715_v3  ;;  %v728_v6 = vsub.f32 %v617_v43, %v718_v4 }
 0x1ac   :  { %1548 = vpow2.f32 %v738_v2 }
 0x1ad   :  { %v1541_v8 = vpop.eup %1540  ;;  %v740_v9 = vmul.f32 1.442695, %v727_v5  ;;  %v742_v10 = vmul.f32 1.442695, %v728_v6 }
 0x1ae   :  { %1495 = vmatmul.mubr.msk.f32.vlgmr.msra.gmra.mrb[8].mxu0 %vm697_vm2, %v1541_v8  ;;  %v721_v11 = vpop.xlane.xlu1 %720  ;;  %v746_v12 = vsel %vm697_vm2, %v1541_v8, 0.0 }
 0x1af   :  { %1550 = vpow2.f32 %v740_v9  ;;  %v729_v13 = vsub.f32 %v693_v46, %v721_v11  ;;  %747 = vadd.xlane.f32.xlu0 %v746_v12  ;;  %1503 = vmatpush3.msra.mxu0 %v82_v7 }
 0x1b0   :  { %1552 = vpow2.f32 %v742_v10  ;;  %1504 = vmatprep.mubr.msk.f32.mxu0 %vm1672_vm0, %v1671_v0  ;;  %1512 = vmatprep.subr.mxu0 %v1671_v0 }
 0x1b1   :  { %v1543_v15 = vpop.eup %1542  ;;  %v744_v16 = vmul.f32 1.442695, %v729_v13 }
 0x1b2   :  { %v1545_v17 = vpop.eup %1544  ;;  %1500 = vmatmul.mubr.msk.f32.vlgmr.msra.gmra.mrb[8].mxu1 %vm697_vm2, %v1543_v15  ;;  %v749_v18 = vsel %vm697_vm2, %v1543_v15, 0.0 }
 0x1b3   :  { %1554 = vpow2.f32 %v744_v16  ;;  %1505 = vmatmul.mubr.msk.f32.vlgmr.msra.gmra.mrb[10].mxu0 %vm697_vm2, %v1545_v17  ;;  %1508 = vmatpush3.msra.mxu1 %v83_v14  ;;  %v752_v20 = vsel %vm697_vm2, %v1545_v17, 0.0 }
 0x1b4   :  { %750 = vadd.xlane.f32.xlu1 %v749_v18  ;;  %753 = vadd.xlane.f32.xlu0 %v752_v20 }
 0x1b5   :  { %v1547_v21 = vpop.eup %1546  ;;  %1509 = vmatprep.mubr.msk.f32.mxu1 %vm1672_vm0, %v1671_v0  ;;  %1513 = vmatpush3.msra.mxu0 %v84_v19 }
 0x1b6   :  { %v1549_v23 = vpop.eup %1548  ;;  %1514 = vmatprep.mubr.msk.f32.mxu0 %vm1672_vm0, %v1671_v0  ;;  %1510 = vmatmul.mubr.msk.f32.vlgmr.msra.gmra.mrb[10].mxu1 %vm697_vm2, %v1547_v21  ;;  %v755_v24 = vsel %vm697_vm2, %v1547_v21, 0.0 }
 0x1b7   :  { %1515 = vmatmul.mubr.msk.f32.vlgmr.msra.gmra.mrb[12].mxu0 %vm697_vm2, %v1549_v23  ;;  %1517 = vmatprep.subr.mxu1 %v1671_v0  ;;  %v758_v25 = vsel %vm697_vm2, %v1549_v23, 0.0 }
 0x1b8   :  { %1518 = vmatpush3.msra.mxu1 %v85_v22  ;;  %756 = vadd.xlane.f32.xlu1 %v755_v24 }
 0x1b9   :  { %v1551_v27 = vpop.eup %1550  ;;  %759 = vadd.xlane.f32.xlu0 %v758_v25  ;;  %1522 = vmatprep.subr.mxu0 %v1671_v0 }
 0x1ba   :  { %v1553_v28 = vpop.eup %1552  ;;  %1519 = vmatprep.mubr.msk.f32.mxu1 %vm1672_vm0, %v1671_v0  ;;  %1523 = vmatpush3.msra.mxu0 %v86_v26  ;;  %v761_v30 = vsel %vm697_vm2, %v1551_v27, 0.0 }
 0x1bb   :  { %1524 = vmatprep.mubr.msk.f32.mxu0 %vm1672_vm0, %v1671_v0  ;;  %1520 = vmatmul.mubr.msk.f32.vlgmr.msra.gmra.mrb[12].mxu1 %vm697_vm2, %v1551_v27  ;;  %v764_v31 = vsel %vm697_vm2, %v1553_v28, 0.0 }
 0x1bc   :  { %1525 = vmatmul.mubr.msk.f32.vlgmr.msra.gmra.mrb[14].mxu0 %vm697_vm2, %v1553_v28  ;;  %1527 = vmatprep.subr.mxu1 %v1671_v0 }
 0x1bd   :  { %v1555_v32 = vpop.eup %1554  ;;  %1528 = vmatpush3.msra.mxu1 %v87_v29  ;;  %762 = vadd.xlane.f32.xlu1 %v761_v30 }
 0x1be   :  { %765 = vadd.xlane.f32.xlu0 %v764_v31  ;;  %1529 = vmatprep.mubr.msk.f32.mxu1 %vm1672_vm0, %v1671_v0  ;;  %v767_v33 = vsel %vm697_vm2, %v1555_v32, 0.0 }
 0x1bf   :  { %1530 = vmatmul.mubr.msk.f32.vlgmr.msra.gmra.mrb[14].mxu1 %vm697_vm2, %v1555_v32 }
 0x1c1   :  { %768 = vadd.xlane.f32.xlu1 %v767_v33 }
 0x23c   :  { %v748_v34 = vpop.xlane.xlu0 %747 }
 0x23d   :  { %1556 = vrcp.f32 %v748_v34 }
 0x241   :  { %v751_v35 = vpop.xlane.xlu1 %750  ;;  %v754_v36 = vpop.xlane.xlu0 %753 }
 0x242   :  { %1558 = vrcp.f32 %v751_v35 }
 0x243   :  { %1560 = vrcp.f32 %v754_v36 }
 0x245   :  { %v757_v37 = vpop.xlane.xlu1 %756 }
 0x246   :  { %v760_v38 = vpop.xlane.xlu0 %759  ;;  %1562 = vrcp.f32 %v757_v37 }
 0x247   :  { %1564 = vrcp.f32 %v760_v38  ;;  %v1557_v40 = vpop.eup %1556 }
 0x24a   :  { %v763_v39 = vpop.xlane.xlu1 %762 }
 0x24b   :  { %v766_v42 = vpop.xlane.xlu0 %765  ;;  %1566 = vrcp.f32 %v763_v39 }
 0x24c   :  { %v1559_v44 = vpop.eup %1558  ;;  %1568 = vrcp.f32 %v766_v42 }
 0x24d   :  { %v1561_v47 = vpop.eup %1560 }
 0x24e   :  { %v769_v45 = vpop.xlane.xlu1 %768 }
 0x24f   :  { %1570 = vrcp.f32 %v769_v45 }
 0x250   :  { %v1563_v53 = vpop.eup %1562 }
 0x251   :  { %v1565_v55 = vpop.eup %1564 }
 0x255   :  { %v1567_v61 = vpop.eup %1566 }
 0x256   :  { %v1569_v63 = vpop.eup %1568 }
 0x259   :  { %v1571_v6 = vpop.eup %1570 }
 0x281   :  { %v839_v41 = vpop.f32.mrb[8].mxu0 }
 0x282   :  { %v1362_v0 = vmul.f32 %v1557_v40, %v839_v41  ;;  %v1496_v43 = vpop.f32.mrb[9].mxu0 }
 0x284   :  { %1370 = vst.msk [vmem:[#allocation8] sm:$0xff] %vm88_vm1, %v1362_v0 }
 0x285   :  { %v912_v46 = vpop.f32.mrb[8].mxu1 }
 0x286   :  { %v1363_v48 = vmul.f32 %v1559_v44, %v912_v46  ;;  %v985_v49 = vpop.f32.mrb[10].mxu0  ;;  %v1501_v50 = vpop.f32.mrb[9].mxu1 }
 0x287   :  { %v1364_v51 = vmul.f32 %v1561_v47, %v985_v49  ;;  %v1506_v52 = vpop.f32.mrb[11].mxu0 }
 0x288   :  { %1371 = vst.msk [vmem:[#allocation8 + $0x8] sm:$0xff] %vm88_vm1, %v1363_v48 }
 0x289   :  { %1372 = vst.msk [vmem:[#allocation8 + $0x10] sm:$0xff] %vm88_vm1, %v1364_v51  ;;  %v1058_v54 = vpop.f32.mrb[10].mxu1 }
 0x28a   :  { %v1365_v56 = vmul.f32 %v1563_v53, %v1058_v54  ;;  %v1131_v57 = vpop.f32.mrb[12].mxu0  ;;  %v1511_v58 = vpop.f32.mrb[11].mxu1 }
 0x28b   :  { %v1366_v59 = vmul.f32 %v1565_v55, %v1131_v57  ;;  %v1516_v60 = vpop.f32.mrb[13].mxu0 }
 0x28c   :  { %1373 = vst.msk [vmem:[#allocation8 + $0x18] sm:$0xff] %vm88_vm1, %v1365_v56 }
 0x28d   :  { %1374 = vst.msk [vmem:[#allocation8 + $0x20] sm:$0xff] %vm88_vm1, %v1366_v59 }
 0x28e   :  { %v1204_v62 = vpop.f32.mrb[12].mxu1 }
 0x28f   :  { %v1367_v1 = vmul.f32 %v1567_v61, %v1204_v62  ;;  %v1277_v2 = vpop.f32.mrb[14].mxu0  ;;  %v1521_v3 = vpop.f32.mrb[13].mxu1 }
 0x290   :  { %v1368_v4 = vmul.f32 %v1569_v63, %v1277_v2  ;;  %v1526_v5 = vpop.f32.mrb[15].mxu0 }
 0x291   :  { %1375 = vst.msk [vmem:[#allocation8 + $0x28] sm:$0xff] %vm88_vm1, %v1367_v1 }
 0x292   :  { %1376 = vst.msk [vmem:[#allocation8 + $0x30] sm:$0xff] %vm88_vm1, %v1368_v4  ;;  %v1350_v7 = vpop.f32.mrb[14].mxu1 }
 0x293   :  { %v1369_v8 = vmul.f32 %v1571_v6, %v1350_v7  ;;  %v1531_v9 = vpop.f32.mrb[15].mxu1 }
 0x295   :  { %1377 = vst.msk [vmem:[#allocation8 + $0x38] sm:$0xff] %vm88_vm1, %v1369_v8 }
 0x296   :  { %1649 = shalt.err (!%p1646_p0)
}
 0x297   :  { %s1650_s27 = scalar_lea.hbm %s1860_s3, 1024 }
 0x298   :  { %p1651_p1 = scmp.ne.s32.totalorder %s1860_s3, %s1650_s27  ;;  %p1654_p2 = scmp.lt.u32.totalorder %s1650_s27, %s1860_s3 }
 0x29a   :  { %p1656_p3 = pnand %p1654_p2, %p1651_p1 }
 0x29c   :  { %1659 = shalt.err (!%p1656_p3)
}
 0x29d   :  { %1389 = dma.vmem_to_hbm [thread:$0]  %s1384_s21, 1024, %s1860_s3, [#allocation4], %s1668_s24, %s1668_s24, %s1669_s25  }
 0x29e   :  { %1664 = dma.done.wait [#allocation4], 1024  }
 0x29f   :  { %1665 = vsyncadd [#allocation4], 4294966272 }
 0x2a0   :  { %1393 = vsyncpa [#allocation3], 1 }
 0x2a1   :  { %1394 = vsyncpa [#allocation6], 1 }
 0x2a2   :  { %1395 = vsyncpa [#allocation4], 1 }

</bundles_post_ra>
